<compile_context>
chip_gen: v6e
topology: v6e:2x2x1
jax: 0.10.0
libtpu: 0.0.40
codegen_flags: <defaults>
</compile_context>

<pallas_src>
import functools

import jax
import jax.numpy as jnp
from jax import lax
from jax.experimental import pallas as pl
from jax.experimental.pallas import tpu as pltpu


def _round_up(x, m):
    return ((x + m - 1) // m) * m


def _pick_h_tile(h_out, w_out, batch, *, min_steps=8, max_rows=512):
    """Largest H_out-divisor tile giving >= min_steps grid steps and
    <= max_rows output rows per step; falls back to the biggest tile that
    fits max_rows if min_steps is unreachable."""
    best = 1
    for th in range(1, h_out + 1):
        if h_out % th:
            continue
        if th * w_out <= max_rows and batch * (h_out // th) >= min_steps:
            best = th
    if best == 1 and batch * h_out < min_steps:
        for th in range(1, h_out + 1):
            if h_out % th == 0 and th * w_out <= max_rows:
                best = th
    return best


# ----------------------------- Pallas kernel --------------------------------
def _modconv_kernel(x_ref, w_ref, o_ref, *,
                    kh, kw, sh, sw, dh, dw, th, w_out, cin):
    """Fused modulated conv2d for one (batch, H-tile) grid step.

    x_ref : [1, H_pad, W_pad, Cin]   bf16 spatially-padded input (resident per batch)
    w_ref : [kh*kw*Cin, N_pad]       bf16 modulated weight (fully resident)
    o_ref : [1, th, W_out, N_pad]    f32 lane-dense output tile (N_pad % 128 == 0)
    """
    h_in = (th - 1) * sh + (kh - 1) * dh + 1
    h0 = pl.multiple_of(pl.program_id(1) * (th * sh), th * sh)
    x = x_ref[0, pl.ds(h0, h_in)]                        # [h_in, W_pad, Cin]

    m_tile = th * w_out
    # Build the lane-dense [M_tile, kh*kw*Cin] patch operand; column order is
    # (kh, kw) outer / Cin inner to match w_ref's row order.
    cols = []
    for idx in range(kh * kw):
        i, j = idx // kw, idx % kw
        win = lax.slice(
            x,
            (i * dh, j * dw, 0),
            (i * dh + (th - 1) * sh + 1, j * dw + (w_out - 1) * sw + 1, cin),
            (sh, sw, 1))                                 # [th, w_out, cin]
        cols.append(win.reshape(m_tile, cin))
    patches = jnp.concatenate(cols, axis=-1)             # [m_tile, kh*kw*cin]

    # Single K = kh*kw*Cin MXU contraction, f32 accumulate (no .T / no in-vreg
    # accumulator across offsets).
    out = lax.dot_general(patches, w_ref[...],
                          dimension_numbers=(((1,), (0,)), ((), ())),
                          preferred_element_type=jnp.float32)
    o_ref[...] = out.reshape(1, th, w_out, o_ref.shape[-1]).astype(o_ref.dtype)


# ------------------------------- Forward ------------------------------------
@functools.partial(
    jax.jit,
    static_argnames=("modulation_factor", "stride", "padding", "dilation"))
def weight_modulation_forward(x, flags, weight, modulations, modulation_factor,
                              stride=(1, 1), padding=(1, 1), dilation=(1, 1)):
    """
    x           : [B, C_in, H, W]        (NCHW, like PyTorch)
    flags       : [B, ntasks]            one-hot task id
    weight      : [C_out, C_in, kh, kw]  (OIHW, like nn.Conv2d.weight)
    modulations : [ntasks, C_out/m1, C_in/m2, kh/m3, kw/m4]
    Returns     : [B, C_out, H_out, W_out]
    """
    B, Cin, H, W = x.shape
    Cout, Cin_w, kh, kw = weight.shape
    assert Cin == Cin_w
    # TODO(synk): groups > 1 convolutions are not implemented (module uses groups=1).

    sh, sw = stride
    ph, pw = padding
    dh, dw = dilation
    H_out = (H + 2 * ph - dh * (kh - 1) - 1) // sh + 1
    W_out = (W + 2 * pw - dw * (kw - 1) - 1) // sw + 1

    # ---- task selection + Expand (matches flags[0].argmax() in the module) ----
    task_id = jnp.argmax(flags[0])
    task_emb = jnp.take(modulations, task_id, axis=0)
    for ax, f in enumerate(modulation_factor):
        if f > 1:
            task_emb = jnp.repeat(task_emb, f, axis=ax)

    # ---- modulation hoisted out of the kernel (fused by XLA) ----
    # W * (1 - E) in f32, laid out [kh*kw*Cin, N_pad] ((kh,kw) outer, Cin
    # inner), lane-dense padded N, cast to bf16 for the MXU.
    N_pad = _round_up(Cout, 128)
    w_mod = weight.astype(jnp.float32) * (1.0 - task_emb.astype(jnp.float32))
    w_kn = w_mod.transpose(2, 3, 1, 0).reshape(kh * kw * Cin, Cout)
    w_kn = jnp.pad(w_kn, ((0, 0), (0, N_pad - Cout))).astype(jnp.bfloat16)

    # ---- NHWC, spatially padded, bf16 input (halves input HBM bytes) ----
    x_nhwc = jnp.pad(x.transpose(0, 2, 3, 1),
                     ((0, 0), (ph, ph), (pw, pw), (0, 0))).astype(jnp.bfloat16)
    H_pad, W_pad = H + 2 * ph, W + 2 * pw

    # ---- grid: (batch, H_out tiles) -> enough steps for DMA/compute overlap ----
    th = _pick_h_tile(H_out, W_out, B)
    n_h = H_out // th
    grid = (B, n_h)

    kernel = functools.partial(_modconv_kernel, kh=kh, kw=kw, sh=sh, sw=sw,
                               dh=dh, dw=dw, th=th, w_out=W_out, cin=Cin)

    # VMEM budget sized from the actual buffers (double-buffered I/O + resident
    # weight), capped for v7x's 64 MiB VMEM.
    in_block_bytes = H_pad * W_pad * Cin * 2
    out_block_bytes = th * W_out * N_pad * 4
    w_block_bytes = kh * kw * Cin * N_pad * 2
    vmem_limit = int(min(max(4 * (in_block_bytes + out_block_bytes)
                             + 2 * w_block_bytes, 16 << 20), 48 << 20))

    M = B * H_out * W_out
    K = kh * kw * Cin

    out_nhwc = pl.pallas_call(
        kernel,
        out_shape=jax.ShapeDtypeStruct((B, H_out, W_out, N_pad), jnp.float32),
        grid_spec=pl.GridSpec(
            grid=grid,
            in_specs=[
                # padded input: resident across the H-tile axis
                pl.BlockSpec((1, H_pad, W_pad, Cin), lambda b, h: (b, 0, 0, 0)),
                # modulated bf16 weight: fully resident
                pl.BlockSpec((kh * kw * Cin, N_pad), lambda b, h: (0, 0)),
            ],
            out_specs=pl.BlockSpec((1, th, W_out, N_pad),
                                   lambda b, h: (b, h, 0, 0)),
        ),
        compiler_params=pltpu.CompilerParams(
            dimension_semantics=("parallel", "parallel"),
            vmem_limit_bytes=vmem_limit),
        cost_estimate=pl.CostEstimate(
            flops=2 * M * Cout * K,
            transcendentals=0,
            bytes_accessed=int(x_nhwc.size * 2 + w_kn.size * 2
                               + B * H_out * W_out * N_pad * 4)),
    )(x_nhwc, w_kn)

    # slice off lane padding + NHWC -> NCHW (one fused XLA op)
    return out_nhwc[..., :Cout].transpose(0, 3, 1, 2)


# --------------------------------- Main --------------------------------------
if __name__ == "__main__":
    key = jax.random.PRNGKey(0)
    k_x, k_w, k_m = jax.random.split(key, 3)

    # Small shapes consistent with the module.
    B, Cin, H, W = 2, 4, 16, 16
    Cout, kh, kw = 8, 3, 3
    ntasks = 3
    modulation_factor = (2, 2, 1, 1)          # must divide (Cout, Cin, kh, kw)
    stride, padding, dilation = (1, 1), (1, 1), (1, 1)

    x = jax.random.normal(k_x, (B, Cin, H, W), jnp.float32)
    weight = jax.random.normal(k_w, (Cout, Cin, kh, kw), jnp.float32) * 0.1
    modulations = jax.random.normal(
        k_m, (ntasks,
              Cout // modulation_factor[0],
              Cin // modulation_factor[1],
              kh // modulation_factor[2],
              kw // modulation_factor[3]), jnp.float32) * 0.05

    # one-hot flags selecting task 1
    flags = jax.nn.one_hot(jnp.full((B,), 1, dtype=jnp.int32), ntasks,
                           dtype=jnp.float32)

    out = weight_modulation_forward(
        x, flags, weight, modulations,
        modulation_factor=modulation_factor,
        stride=stride, padding=padding, dilation=dilation)
    out = jax.block_until_ready(out)

    # ---- reference check (same bf16-operand / f32-accumulate numerics) ----
    emb = modulations[1]
    for ax, f in enumerate(modulation_factor):
        if f > 1:
            emb = jnp.repeat(emb, f, axis=ax)
    w_mod = weight * (1.0 - emb)
    ref = lax.conv_general_dilated(
        x.astype(jnp.bfloat16), w_mod.astype(jnp.bfloat16),
        window_strides=stride,
        padding=[(padding[0], padding[0]), (padding[1], padding[1])],
        rhs_dilation=dilation,
        dimension_numbers=("NCHW", "OIHW", "NCHW"),
        preferred_element_type=jnp.float32)
    assert out.shape == (B, Cout, H, W), out.shape
    assert jnp.allclose(out, ref, atol=2e-3, rtol=2e-3), \
        float(jnp.max(jnp.abs(out - ref)))

    print("KERNEL_OK")
</pallas_src>

<mosaic_0001>
module attributes {stable_mosaic.version = 11 : i64} {
  func.func @_modconv_kernel(%arg0: i32, %arg1: i32, %arg2: memref<1x18x18x4xbf16, #tpu.memory_space<vmem>>, %arg3: memref<36x128xbf16, #tpu.memory_space<vmem>>, %arg4: memref<1x4x16x128xf32, #tpu.memory_space<vmem>>) attributes {dimension_semantics = [#tpu.dimension_semantics<parallel>, #tpu.dimension_semantics<parallel>], iteration_bounds = array<i64: 2, 4>, scalar_prefetch = 0 : i64, scratch_operands = 0 : i64, tpu.core_type = #tpu.core_type<tc>, window_params = [{transform_indices = @transform_0, window_bounds = array<i64: 1, 18, 18, 4>}, {pipeline_mode = #tpu.pipeline_mode<synchronous>, transform_indices = @transform_1, window_bounds = array<i64: 36, 128>}, {transform_indices = @transform_2, window_bounds = array<i64: 1, 4, 16, 128>}]} {
    %c4_i32 = arith.constant 4 : i32
    %0 = arith.muli %arg1, %c4_i32 : i32
    %1 = tpu.assume_multiple %0, 4 : i32
    %c0 = arith.constant 0 : index
    %2 = arith.index_cast %1 : i32 to index
    %c0_0 = arith.constant 0 : index
    %c0_1 = arith.constant 0 : index
    %3 = vector.load %arg2[%c0, %2, %c0_0, %c0_1] : memref<1x18x18x4xbf16, #tpu.memory_space<vmem>>, vector<1x6x18x4xbf16>
    %4 = vector.shape_cast %3 : vector<1x6x18x4xbf16> to vector<6x18x4xbf16>
    %5 = vector.extract_strided_slice %4 {offsets = [0, 0, 0], sizes = [4, 16, 4], strides = [1, 1, 1]} : vector<6x18x4xbf16> to vector<4x16x4xbf16>
    %6 = vector.shape_cast %5 : vector<4x16x4xbf16> to vector<64x4xbf16>
    %7 = vector.extract_strided_slice %4 {offsets = [0, 1, 0], sizes = [4, 16, 4], strides = [1, 1, 1]} : vector<6x18x4xbf16> to vector<4x16x4xbf16>
    %8 = vector.shape_cast %7 : vector<4x16x4xbf16> to vector<64x4xbf16>
    %9 = vector.extract_strided_slice %4 {offsets = [0, 2, 0], sizes = [4, 16, 4], strides = [1, 1, 1]} : vector<6x18x4xbf16> to vector<4x16x4xbf16>
    %10 = vector.shape_cast %9 : vector<4x16x4xbf16> to vector<64x4xbf16>
    %11 = vector.extract_strided_slice %4 {offsets = [1, 0, 0], sizes = [4, 16, 4], strides = [1, 1, 1]} : vector<6x18x4xbf16> to vector<4x16x4xbf16>
    %12 = vector.shape_cast %11 : vector<4x16x4xbf16> to vector<64x4xbf16>
    %13 = vector.extract_strided_slice %4 {offsets = [1, 1, 0], sizes = [4, 16, 4], strides = [1, 1, 1]} : vector<6x18x4xbf16> to vector<4x16x4xbf16>
    %14 = vector.shape_cast %13 : vector<4x16x4xbf16> to vector<64x4xbf16>
    %15 = vector.extract_strided_slice %4 {offsets = [1, 2, 0], sizes = [4, 16, 4], strides = [1, 1, 1]} : vector<6x18x4xbf16> to vector<4x16x4xbf16>
    %16 = vector.shape_cast %15 : vector<4x16x4xbf16> to vector<64x4xbf16>
    %17 = vector.extract_strided_slice %4 {offsets = [2, 0, 0], sizes = [4, 16, 4], strides = [1, 1, 1]} : vector<6x18x4xbf16> to vector<4x16x4xbf16>
    %18 = vector.shape_cast %17 : vector<4x16x4xbf16> to vector<64x4xbf16>
    %19 = vector.extract_strided_slice %4 {offsets = [2, 1, 0], sizes = [4, 16, 4], strides = [1, 1, 1]} : vector<6x18x4xbf16> to vector<4x16x4xbf16>
    %20 = vector.shape_cast %19 : vector<4x16x4xbf16> to vector<64x4xbf16>
    %21 = vector.extract_strided_slice %4 {offsets = [2, 2, 0], sizes = [4, 16, 4], strides = [1, 1, 1]} : vector<6x18x4xbf16> to vector<4x16x4xbf16>
    %22 = vector.shape_cast %21 : vector<4x16x4xbf16> to vector<64x4xbf16>
    %23 = tpu.concatenate %6, %8, %10, %12, %14, %16, %18, %20, %22 in 1 : vector<64x4xbf16>, vector<64x4xbf16>, vector<64x4xbf16>, vector<64x4xbf16>, vector<64x4xbf16>, vector<64x4xbf16>, vector<64x4xbf16>, vector<64x4xbf16>, vector<64x4xbf16> -> vector<64x36xbf16>
    %c0_2 = arith.constant 0 : index
    %c0_3 = arith.constant 0 : index
    %24 = vector.load %arg3[%c0_2, %c0_3] : memref<36x128xbf16, #tpu.memory_space<vmem>>, vector<36x128xbf16>
    %cst = arith.constant dense<0.000000e+00> : vector<64x128xf32>
    %25 = tpu.matmul %23, %24, %cst {dimension_numbers = #tpu.dot_dimension_numbers<[1], [0], [0], [1], [0, 0, 1, 1], [], []>} : vector<64x36xbf16>, vector<36x128xbf16>, vector<64x128xf32> -> vector<64x128xf32>
    %26 = vector.shape_cast %25 : vector<64x128xf32> to vector<1x4x16x128xf32>
    %c0_4 = arith.constant 0 : index
    %c0_5 = arith.constant 0 : index
    %c0_6 = arith.constant 0 : index
    %c0_7 = arith.constant 0 : index
    %27 = vector.load %arg4[%c0_4, %c0_5, %c0_6, %c0_7] : memref<1x4x16x128xf32, #tpu.memory_space<vmem>>, vector<1x4x16x128xf32>
    tpu.vector_store %arg4[%c0_4, %c0_5, %c0_6, %c0_7], %26 {strides = array<i32>} : memref<1x4x16x128xf32, #tpu.memory_space<vmem>>, vector<1x4x16x128xf32>,
    return
  }
  func.func @transform_0(%arg0: i32, %arg1: i32) -> (i32, i32, i32, i32) {
    %c0_i32 = arith.constant 0 : i32
    %c0_i32_0 = arith.constant 0 : i32
    %c0_i32_1 = arith.constant 0 : i32
    %c0_i32_2 = arith.constant 0 : i32
    return %arg0, %c0_i32, %c0_i32_0, %c0_i32_1 : i32, i32, i32, i32
  }
  func.func @transform_1(%arg0: i32, %arg1: i32) -> (i32, i32) {
    %c0_i32 = arith.constant 0 : i32
    %c0_i32_0 = arith.constant 0 : i32
    %c0_i32_1 = arith.constant 0 : i32
    return %c0_i32, %c0_i32_0 : i32, i32
  }
  func.func @transform_2(%arg0: i32, %arg1: i32) -> (i32, i32, i32, i32) {
    %c0_i32 = arith.constant 0 : i32
    %c0_i32_0 = arith.constant 0 : i32
    %c0_i32_1 = arith.constant 0 : i32
    return %arg0, %arg1, %c0_i32, %c0_i32_0 : i32, i32, i32, i32
  }
}

</mosaic_0001>

<bundles_post_ra>
// kernel: weight_modulation_forward.1
= control target key start
LH: loop header
LB: loop body
LE: loop exit
PB: predicated region body
PF: predicated region fallthrough
CT: control target
= control target key end

     0   :  { %s991_s9 = smov 0   ;;  %s993_s10 = smov 0   ;;  %s1316_s0 = inlined_call_operand.vmem [shape: bf16[2,18,18,4], index: 0, kind: input, shape index: {}]   ;;  %s1317_s1 = inlined_call_operand.vmem [shape: bf16[36,128], index: 1, kind: input, shape index: {}]   ;;  %s1318_s2 = inlined_call_operand.vmem [shape: f32[2,16,16,128], index: 2, kind: output, shape index: {}]  }
   0x1   :  { %s995_s11 = smov 0   ;;  %s997_s12 = smov 0  }
   0x2   :  { %s999_s13 = smov 0  }
   0x3 LB: > { %s21_s14 = sadd.s32 1, %s958_s11  ;;  %s24_s15 = sadd.s32 1, %s962_s12  ;;  %s966_s13 = sphi %s999_s13, %s12_s13   ;;  %s962_s12 = sphi %s997_s12, %s1326_s12   ;;  %s958_s11 = sphi %s995_s11, %s1325_s11   ;;  %s954_s10 = sphi %s993_s10, %s1324_s10   ;;  %s950_s9 = sphi %s991_s9, %s1323_s9  }
   0x4   : > { %p22_p0 = scmp.ge.s32.totalorder %s21_s14, 4  ;;  %p798_p1 = scmp.ge.s32.totalorder %s966_s13, 1 }
   0x5   : > { %p126_p2 = scmp.lt.s32.totalorder %s966_s13, 9 }
   0x6   : > { %s1328_s14 = smov (%p22_p0, %s21_s14), 0  ;;  %s1330_s15 = smov (!%p22_p0, %s24_s15), %s962_s12 }
   0x7   : > { %p127_p3 = pnand %p798_p1, %p126_p2  ;;  %p26_p4 = scmp.ge.s32.totalorder %s1330_s15, 2 }
   0x8   : > { %p153_p5 = scmp.lt.s32.totalorder (!%p127_p3), %s954_s10, 1  ;;  %s840_s16 = smul.u32 (!%p127_p3), 48, %s950_s9 }
   0x9   : > { %s1332_s15 = smov (%p26_p4, %s1330_s15), 0  ;;  %130 = sbr.rel (%p127_p3) target bundleno = 407 (0x197), region = 28 }
   0xa   : > { %s968_s22 = smov (!%p127_p3), 12   ;;  %s969_s23 = smov (!%p127_p3), 8  }
   0xb   : > { %s970_s24 = smov (!%p127_p3), 4   ;;  %s971_s25 = smov (!%p127_p3), 16  }
   0xc   : > { %s972_s26 = smov (!%p127_p3), 20   ;;  %s973_s29 = smov (!%p127_p3), 24  }
   0xd   : > { %s974_s6 = smov (!%p127_p3), 28   ;;  %s975_s7 = smov (!%p127_p3), 32  }
   0xe   : > { %s1334_s10 = smov (!%p153_p5, %s954_s10), 1  ;;  %vm303_vm0 = vcmask 1042432   ;;  %vm304_vm1 = vcmask 1046532   ;;  %vm192_vm2 = vsmask.f32 3328  ;;  %vm625_vm6 = vcmask 1041408  }
   0xf   : > { %s870_s17 = smul.u32 216, %s1334_s10  ;;  %vm193_vm3 = vsmask.f32 7440  ;;  %vm1080_vm4 = vmor %vm303_vm0, %vm304_vm1  ;;  %vm520_vm7 = vcmask 31744   ;;  %vm533_vm8 = vcmask 64512   ;;  %vm542_vm9 = vcmask 97280  }
  0x10   : > { %vm1127_vm5 = vmor %vm192_vm2, %vm193_vm3  ;;  %vm551_vm10 = vcmask 130048   ;;  %vm560_vm11 = vcmask 162816   ;;  %vm569_vm12 = vcmask 195584   ;;  %vm578_vm13 = vcmask 228352   ;;  %s800_s8 = sshll.u32 %s950_s9, 2 }
  0x11   : > { %s157_s20 = scalar_lea.vmem %s1316_s0, %s870_s17  ;;  %vm587_vm14 = vcmask 261120   ;;  %vm616_vm15 = vcmask 293888   ;;  %p161_p6 = scmp.lt.s32.totalorder %s800_s8, 15 }
  0x12   : > { %s1030_s21 = scalar_lea.vmem %s157_s20, %s840_s16  ;;  %s802_s17 = sshll.u32 %s1334_s10, 5 }
  0x13   : > { %v1033_v0 = vld [vmem:[%s1030_s21 + $0x24] sm:$0xf]  ;;  %v1036_v1 = vld [vmem:[%s1030_s21 + $0x28] sm:$0xf]  ;;  %v1039_v2 = vld [vmem:[%s1030_s21 + $0xc] sm:$0xf] }
  0x14   : > { %v281_v3 = vshrl.u32 %v1036_v1, 16  ;;  %v1044_v4 = vcombine.low %v1033_v0, %v1036_v1  ;;  %v268_v5 = vshrl.u32 %v1033_v0, 16  ;;  %v271_v6 = vshll.u32 %v1033_v0, 16  ;;  %v178_v7 = vld [vmem:[%s1030_s21 + $0x10] sm:$0xf]  ;;  %s1336_s8 = smov (!%p161_p6, %s800_s8), 15 }
  0x15   : > { %v229_v8 = vshll.u32 %v178_v7, 16  ;;  %v233_v9 = vshrl.u32 %v178_v7, 16  ;;  %v1050_v10 = vcombine.low %v1039_v2, %v178_v7  ;;  %v220_v11 = vshrl.u32 %v1039_v2, 16  ;;  %v1054_v12 = vld [vmem:[%s1030_s21 + $0x30] sm:$0xf]  ;;  %s801_s16 = sshll.u32 %s1336_s8, 1 }
  0x16   : > { %461 = vrot.lane.b32.xlu1 %v1044_v4, %s968_s22  ;;  %v223_v13 = vshll.u32 %v1039_v2, 16  ;;  %v1059_v14 = vld [vmem:[%s1030_s21 + $0x34] sm:$0xf]  ;;  %v335_v15 = vshrl.u32 %v1054_v12, 16  ;;  %v338_v16 = vshll.u32 %v1054_v12, 16  ;;  %v810_v17 = vrot.slane %v1033_v0, 9  ;;  %s165_s18 = sadd.s32 %s802_s17, %s801_s16 }
  0x17   : > { %v235_v18 = vrot.slane %v233_v9, 4  ;;  %457 = vrot.lane.b32.xlu0 %v1050_v10, %s968_s22  ;;  %v222_v19 = vrot.slane %v220_v11, 4  ;;  %v348_v20 = vshrl.u32 %v1059_v14, 16  ;;  %v1068_v21 = vcombine.low %v1054_v12, %v1059_v14  ;;  %v1071_v22 = vld [vmem:[%s1030_s21 + $0x18] sm:$0xf]  ;;  %s803_s19 = sshll.u32 %s165_s18, 3 }
  0x18   : > { %v225_v23 = vrot.slane %v223_v13, 5  ;;  %v1074_v24 = vld [vmem:[%s1030_s21 + $0x1c] sm:$0xf]  ;;  %v244_v25 = vshrl.u32 %v1071_v22, 16  ;;  %v247_v26 = vshll.u32 %v1071_v22, 16  ;;  %v809_v28 = vrot.slane %v1071_v22, 9 }
  0x19   : > { %v257_v29 = vshrl.u32 %v1074_v24, 16  ;;  %v1088_v30 = vcombine.low %v1071_v22, %v1074_v24  ;;  %v1091_v31 = vld [vmem:[%s1030_s21 + $0x20] sm:$0x1]  ;;  %v322_v32 = vrot.slane %v1074_v24, 5  ;;  %v1100_v35 = vld [vmem:[%s1030_s21 + $0x4] sm:$0xf] }
  0x1a   : > { %v1095_v33 = vld [vmem:[%s1030_s21] sm:$0xf]  ;;  %463 = vrot.lane.b32.xlu1 %v1068_v21, %s968_s22  ;;  %v325_v34 = vrot.slane %v1091_v31, 5  ;;  %v176_v36 = vld [vmem:[%s1030_s21 + $0x8] sm:$0x1]  ;;  %v226_v38 = vor.u32 %v225_v23, %v222_v19  ;;  %v308_v41 = vrot.slane %v1100_v35, 5 }
  0x1b   : > { %v807_v37 = vrot.slane %v1095_v33, 9  ;;  %459 = vrot.lane.b32.xlu0 %v1088_v30, %s968_s22  ;;  %v323_v39 = vsel %vm1080_vm4, %v809_v28, %v322_v32  ;;  %v324_v40 = vrot.slane %v322_v32, 4  ;;  %v311_v42 = vrot.slane %v176_v36, 5  ;;  %v1109_v43 = vld [vmem:[%s1030_s21 + $0x2c] sm:$0x1]  ;;  %s167_s22 = scalar_lea.vmem %s1318_s2, %s803_s19 }
  0x1c   : > { %v329_v44 = vrot.slane %v1036_v1, 5  ;;  %v332_v45 = vrot.slane %v1109_v43, 5  ;;  %v179_v46 = vld [vmem:[%s1030_s21 + $0x14] sm:$0x1]  ;;  %v808_v47 = vrot.slane %v1039_v2, 9  ;;  %v315_v48 = vrot.slane %v178_v7, 5 }
  0x1d   : > { %v326_v49 = vsel %vm1080_vm4, %v324_v40, %v325_v34  ;;  %v309_v50 = vsel %vm1080_vm4, %v807_v37, %v308_v41  ;;  %v310_v51 = vrot.slane %v308_v41, 4  ;;  %v318_v52 = vrot.slane %v179_v46, 5 }
  0x1e   : > { %v1119_v53 = vcombine.low %v323_v39, %v326_v49  ;;  %v330_v54 = vsel %vm1080_vm4, %v810_v17, %v329_v44  ;;  %v331_v55 = vrot.slane %v329_v44, 4  ;;  %v316_v56 = vsel %vm1080_vm4, %v808_v47, %v315_v48 }
  0x1f   : > { %v312_v58 = vsel %vm1080_vm4, %v310_v51, %v311_v42  ;;  %v317_v59 = vrot.slane %v315_v48, 4  ;;  %v227_v60 = vrot.slane %v226_v38, 4  ;;  %v231_v61 = vrot.slane %v229_v8, 5 }
  0x20   : > { %450 = vrot.lane.b32.xlu1 %v1119_v53, %s969_s23  ;;  %v821_v62 = vcombine.low %v309_v50, %v312_v58  ;;  %v333_v63 = vsel %vm1080_vm4, %v331_v55, %v332_v45  ;;  %v239_v2 = vshll.u32 %v179_v46, 16  ;;  %v196_v7 = vshrl.u32 %v1095_v33, 16 }
  0x21   : > { %v1137_v9 = vcombine.low %v330_v54, %v333_v63  ;;  %v319_v11 = vsel %vm1080_vm4, %v317_v59, %v318_v52  ;;  %v232_v13 = vsel %vm1127_vm5, %v227_v60, %v231_v61  ;;  %v236_v17 = vor.u32 %v235_v18, %v231_v61 }
  0x22   : > { %446 = vrot.lane.b32.xlu0 %v821_v62, %s969_s23  ;;  %v1143_v8 = vcombine.low %v316_v56, %v319_v11  ;;  %v241_v19 = vrot.slane %v239_v2, 5  ;;  %v198_v23 = vrot.slane %v196_v7, 4  ;;  %v199_v28 = vshll.u32 %v1095_v33, 16  ;;  %v188_v2 = vld [vmem:[%s1030_s21 + $0x38] sm:$0x1] }
  0x23   : > { %v237_v32 = vrot.slane %v236_v17, 4  ;;  %v205_v34 = vshll.u32 %v1100_v35, 16  ;;  %v209_v37 = vshrl.u32 %v1100_v35, 16  ;;  %v215_v38 = vshll.u32 %v176_v36, 16 }
  0x24   : > { %452 = vrot.lane.b32.xlu1 %v1137_v9, %s969_s23  ;;  %v201_v39 = vrot.slane %v199_v28, 5  ;;  %v270_v40 = vrot.slane %v268_v5, 4  ;;  %v273_v18 = vrot.slane %v271_v6, 5  ;;  %v277_v41 = vshll.u32 %v1036_v1, 16 }
  0x25   : > { %v242_v42 = vsel %vm1127_vm5, %v237_v32, %v241_v19  ;;  %v207_v44 = vrot.slane %v205_v34, 5  ;;  %v211_v45 = vrot.slane %v209_v37, 4  ;;  %v217_v46 = vrot.slane %v215_v38, 5 }
  0x26   : > { %448 = vrot.lane.b32.xlu0 %v1143_v8, %s969_s23  ;;  %v818_v36 = vcombine.low %v232_v13, %v242_v42  ;;  %v202_v47 = vor.u32 %v201_v39, %v198_v23  ;;  %v274_v48 = vor.u32 %v273_v18, %v270_v40  ;;  %v279_v49 = vrot.slane %v277_v41, 5 }
  0x27   : > { %v212_v50 = vor.u32 %v211_v45, %v207_v44  ;;  %v283_v5 = vrot.slane %v281_v3, 4  ;;  %v287_v0 = vshll.u32 %v1109_v43, 16  ;;  %v246_v6 = vrot.slane %v244_v25, 4 }
  0x28   : > { %428 = vrot.lane.b32.xlu1 %v818_v36, %s970_s24  ;;  %v203_v51 = vrot.slane %v202_v47, 4  ;;  %v275_v52 = vrot.slane %v274_v48, 4  ;;  %v249_v54 = vrot.slane %v247_v26, 5  ;;  %v253_v55 = vshll.u32 %v1074_v24, 16  ;;  %v1206_v47 = vld [vmem:[%s1030_s21 + $0x3c] sm:$0xf] }
  0x29   : > { %v213_v56 = vrot.slane %v212_v50, 4  ;;  %v284_v58 = vor.u32 %v283_v5, %v279_v49  ;;  %v289_v1 = vrot.slane %v287_v0, 5  ;;  %v259_v3 = vrot.slane %v257_v29, 4  ;;  %v1209_v48 = vld [vmem:[%s1030_s21 + $0x40] sm:$0xf] }
  0x2a   : > { %v208_v25 = vsel %vm1127_vm5, %v203_v51, %v207_v44  ;;  %v280_v43 = vsel %vm1127_vm5, %v275_v52, %v279_v49  ;;  %v250_v59 = vor.u32 %v249_v54, %v246_v6  ;;  %v255_v60 = vrot.slane %v253_v55, 5 }
  0x2b   : > { %v218_v22 = vsel %vm1127_vm5, %v213_v56, %v217_v46  ;;  %v285_v26 = vrot.slane %v284_v58, 4  ;;  %v263_v61 = vshll.u32 %v1091_v31, 16  ;;  %v337_v62 = vrot.slane %v335_v15, 4  ;;  %v191_v58 = vld [vmem:[%s1030_s21 + $0x44] sm:$0x1] }
  0x2c   : > { %v817_v63 = vcombine.low %v208_v25, %v218_v22  ;;  %v251_v24 = vrot.slane %v250_v59, 4  ;;  %v260_v29 = vor.u32 %v259_v3, %v255_v60  ;;  %v340_v7 = vrot.slane %v338_v16, 5 }
  0x2d   : > { %v290_v11 = vsel %vm1127_vm5, %v285_v26, %v289_v1  ;;  %v265_v13 = vrot.slane %v263_v61, 5  ;;  %v344_v17 = vshll.u32 %v1059_v14, 16  ;;  %v350_v19 = vrot.slane %v348_v20, 4  ;;  %v926_v61 = vld [vmem:[%s1317_s1 + $0x8] sm:$0xff]  }
  0x2e   : > { %426 = vrot.lane.b32.xlu0 %v817_v63, %s970_s24  ;;  %v1186_v31 = vcombine.low %v280_v43, %v290_v11  ;;  %v256_v15 = vsel %vm1127_vm5, %v251_v24, %v255_v60  ;;  %v261_v23 = vrot.slane %v260_v29, 4  ;;  %v341_v28 = vor.u32 %v340_v7, %v337_v62  ;;  %v925_v43 = vld [vmem:[%s1317_s1 + $0x10] ss:$0 sps:$4 sm:$0x33]   ;;  %v927_v24 = vld [vmem:[%s1317_s1] sm:$0xff]  }
  0x2f   : > { %v346_v32 = vrot.slane %v344_v17, 5  ;;  %v354_v16 = vshll.u32 %v188_v2, 16  ;;  %v363_v40 = vrot.slane %v1059_v14, 5  ;;  %v811_v42 = vrot.slane %v1054_v12, 9  ;;  %868 = vmatprep.subr.msk.bf16.mxu0 %vm625_vm6, %v925_v43  ;;  %869 = vmatprep.subr.msk.bf16.mxu1 %vm625_vm6, %v925_v43 }
  0x30   : > { %432 = vrot.lane.b32.xlu1 %v1186_v31, %s970_s24  ;;  %v266_v34 = vsel %vm1127_vm5, %v261_v23, %v265_v13  ;;  %v342_v37 = vrot.slane %v341_v28, 4  ;;  %v366_v46 = vrot.slane %v188_v2, 5  ;;  %v369_v50 = vshrl.u32 %v1206_v47, 16 }
  0x31   : > { %v1194_v20 = vcombine.low %v256_v15, %v266_v34  ;;  %v351_v38 = vor.u32 %v350_v19, %v346_v32  ;;  %v356_v39 = vrot.slane %v354_v16, 5  ;;  %v365_v45 = vrot.slane %v363_v40, 4 }
  0x32   : > { %v347_v18 = vsel %vm1127_vm5, %v342_v37, %v346_v32  ;;  %v364_v49 = vsel %vm1080_vm4, %v811_v42, %v363_v40  ;;  %v813_v12 = vcombine.low %v1095_v33, %v1100_v35  ;;  %v372_v0 = vshll.u32 %v1206_v47, 16 }
  0x33   : > { %430 = vrot.lane.b32.xlu0 %v1194_v20, %s970_s24  ;;  %v352_v41 = vrot.slane %v351_v38, 4  ;;  %v367_v5 = vsel %vm1080_vm4, %v365_v45, %v366_v46  ;;  %v382_v6 = vshrl.u32 %v1209_v48, 16  ;;  %v378_v51 = vshll.u32 %v1209_v48, 16 }
  0x34   : > { %472 = vrot.lane.b32.xlu1 %v1186_v31, %s971_s25  ;;  %v371_v52 = vrot.slane %v369_v50, 4  ;;  %v374_v54 = vrot.slane %v372_v0, 5  ;;  %v388_v25 = vshll.u32 %v191_v58, 16  ;;  %v627_v59 = vsel %vm625_vm6, %v925_v43, 0 }
  0x35   : > { %v357_v44 = vsel %vm1127_vm5, %v352_v41, %v356_v39  ;;  %v380_v55 = vrot.slane %v378_v51, 5  ;;  %v384_v56 = vrot.slane %v382_v6, 4  ;;  %v828_v60 = vcombine.low %v1206_v47, %v1209_v48  ;;  %849 = vmatpush3.bf16.msra.mxu0 %v627_v59  ;;  %865 = vmatpush3.bf16.msra.mxu1 %v627_v59 }
  0x36   : > { %v826_v14 = vcombine.low %v347_v18, %v357_v44  ;;  %v375_v1 = vor.u32 %v374_v54, %v371_v52  ;;  %v390_v26 = vrot.slane %v388_v25, 5  ;;  %850 = vmatprep.subr.bf16.mxu0 %v926_v61  ;;  %863 = vmatprep.subr.bf16.mxu1 %v926_v61  ;;  %v397_v63 = vrot.slane %v1209_v48, 5 }
  0x37   : > { %468 = vrot.lane.b32.xlu0 %v818_v36, %s971_s25  ;;  %v827_v36 = vcombine.low %v364_v49, %v367_v5  ;;  %v385_v3 = vor.u32 %v384_v56, %v380_v55  ;;  %v812_v2 = vrot.slane %v1206_v47, 9  ;;  %v400_v57 = vrot.slane %v191_v58, 5 }
  0x38   : > { %474 = vrot.lane.b32.xlu1 %v826_v14, %s971_s25  ;;  %v399_v7 = vrot.slane %v397_v63, 4 }
  0x39   : > { %v386_v22 = vrot.slane %v385_v3, 4  ;;  %851 = vmatpush3.bf16.msra.mxu0 %v926_v61  ;;  %866 = vmatpush3.bf16.msra.mxu1 %v926_v61  ;;  %v398_v11 = vsel %vm1080_vm4, %v812_v2, %v397_v63 }
  0x3a   : > { %852 = vmatprep.subr.bf16.mxu0 %v927_v24  ;;  %864 = vmatprep.subr.bf16.mxu1 %v927_v24  ;;  %v401_v13 = vsel %vm1080_vm4, %v399_v7, %v400_v57 }
  0x3b   : > { %470 = vrot.lane.b32.xlu0 %v1194_v20, %s971_s25  ;;  %v391_v62 = vsel %vm1127_vm5, %v386_v22, %v390_v26  ;;  %v830_v17 = vcombine.low %v398_v11, %v401_v13 }
  0x3c   : > { %483 = vrot.lane.b32.xlu1 %v1137_v9, %s972_s26 }
  0x3d   : > { %853 = vmatpush3.bf16.msra.mxu0 %v927_v24  ;;  %867 = vmatpush3.bf16.msra.mxu1 %v927_v24 }
  0x3f   : > { %479 = vrot.lane.b32.xlu0 %v1143_v8, %s972_s26  ;;  %v376_v8 = vrot.slane %v375_v1, 4 }
  0x40   : > { %485 = vrot.lane.b32.xlu1 %v827_v36, %s972_s26 }
  0x43   : > { %481 = vrot.lane.b32.xlu0 %v1119_v53, %s972_s26 }
  0x44   : > { %494 = vrot.lane.b32.xlu1 %v1068_v21, %s973_s29  ;;  %v381_v21 = vsel %vm1127_vm5, %v376_v8, %v380_v55 }
  0x45   : > { %v829_v29 = vcombine.low %v381_v21, %v391_v62 }
  0x47   : > { %490 = vrot.lane.b32.xlu0 %v1088_v30, %s973_s29 }
  0x48   : > { %496 = vrot.lane.b32.xlu1 %v828_v60, %s973_s29 }
  0x4b   : > { %492 = vrot.lane.b32.xlu0 %v1044_v4, %s973_s29 }
  0x4c   : > { %505 = vrot.lane.b32.xlu1 %v826_v14, %s974_s6 }
  0x4f   : > { %501 = vrot.lane.b32.xlu0 %v1194_v20, %s974_s6 }
  0x50   : > { %507 = vrot.lane.b32.xlu1 %v829_v29, %s974_s6 }
  0x53   : > { %503 = vrot.lane.b32.xlu0 %v1186_v31, %s974_s6 }
  0x54   : > { %516 = vrot.lane.b32.xlu1 %v827_v36, %s975_s7 }
  0x57   : > { %512 = vrot.lane.b32.xlu0 %v1119_v53, %s975_s7 }
  0x58   : > { %518 = vrot.lane.b32.xlu1 %v830_v17, %s975_s7 }
  0x5b   : > { %514 = vrot.lane.b32.xlu0 %v1137_v9, %s975_s7 }
  0x88   : > { %v462_v19 = vpop.permute.xlu1 %461 }
  0x89   : > { %v458_v15 = vpop.permute.xlu0 %457 }
  0x8c   : > { %v464_v23 = vpop.permute.xlu1 %463 }
  0x8d   : > { %v460_v28 = vpop.permute.xlu0 %459 }
  0x92   : > { %v451_v32 = vpop.permute.xlu1 %450 }
  0x94   : > { %v447_v16 = vpop.permute.xlu0 %446 }
  0x96   : > { %v453_v34 = vpop.permute.xlu1 %452 }
  0x98   : > { %v449_v37 = vpop.permute.xlu0 %448 }
  0x9a   : > { %v429_v27 = vpop.permute.xlu1 %428 }
  0x9b   : > { %v526_v52 = vsel %vm520_vm7, %v1050_v10, %v429_v27 }
  0x9c   : > { %v537_v56 = vsel %vm533_vm8, %v526_v52, %v449_v37 }
  0x9d   : > { %v546_v22 = vsel %vm542_vm9, %v537_v56, %v460_v28 }
  0xa0   : > { %v427_v20 = vpop.permute.xlu0 %426 }
  0xa1   : > { %v523_v5 = vsel %vm520_vm7, %v813_v12, %v427_v20 }
  0xa2   : > { %v433_v38 = vpop.permute.xlu1 %432  ;;  %v535_v51 = vsel %vm533_vm8, %v523_v5, %v447_v16 }
  0xa3   : > { %v532_v0 = vsel %vm520_vm7, %v1044_v4, %v433_v38  ;;  %v544_v4 = vsel %vm542_vm9, %v535_v51, %v458_v15 }
  0xa4   : > { %v541_v33 = vsel %vm533_vm8, %v532_v0, %v453_v34 }
  0xa5   : > { %v431_v31 = vpop.permute.xlu0 %430  ;;  %v550_v10 = vsel %vm542_vm9, %v541_v33, %v464_v23 }
  0xa6   : > { %v473_v39 = vpop.permute.xlu1 %472  ;;  %v529_v47 = vsel %vm520_vm7, %v1088_v30, %v431_v31 }
  0xa7   : > { %v539_v48 = vsel %vm533_vm8, %v529_v47, %v451_v32 }
  0xa8   : > { %v548_v6 = vsel %vm542_vm9, %v539_v48, %v462_v19 }
  0xa9   : > { %v469_v40 = vpop.permute.xlu0 %468  ;;  %v557_v35 = vsel %vm551_vm10, %v548_v6, %v473_v39 }
  0xaa   : > { %v475_v18 = vpop.permute.xlu1 %474  ;;  %v553_v58 = vsel %vm551_vm10, %v544_v4, %v469_v40 }
  0xab   : > { %v559_v25 = vsel %vm551_vm10, %v550_v10, %v475_v18 }
  0xad   : > { %v471_v41 = vpop.permute.xlu0 %470 }
  0xae   : > { %v484_v53 = vpop.permute.xlu1 %483  ;;  %v555_v62 = vsel %vm551_vm10, %v546_v22, %v471_v41 }
  0xaf   : > { %v566_v12 = vsel %vm560_vm11, %v557_v35, %v484_v53 }
  0xb1   : > { %v480_v42 = vpop.permute.xlu0 %479 }
  0xb2   : > { %v486_v44 = vpop.permute.xlu1 %485  ;;  %v562_v43 = vsel %vm560_vm11, %v553_v58, %v480_v42 }
  0xb3   : > { %v568_v60 = vsel %vm560_vm11, %v559_v25, %v486_v44 }
  0xb5   : > { %v482_v9 = vpop.permute.xlu0 %481 }
  0xb6   : > { %v495_v45 = vpop.permute.xlu1 %494  ;;  %v564_v2 = vsel %vm560_vm11, %v555_v62, %v482_v9 }
  0xb7   : > { %v575_v54 = vsel %vm569_vm12, %v566_v12, %v495_v45 }
  0xb9   : > { %v491_v46 = vpop.permute.xlu0 %490 }
  0xba   : > { %v497_v14 = vpop.permute.xlu1 %496  ;;  %v571_v8 = vsel %vm569_vm12, %v562_v43, %v491_v46 }
  0xbb   : > { %v577_v26 = vsel %vm569_vm12, %v568_v60, %v497_v14 }
  0xbd   : > { %v493_v49 = vpop.permute.xlu0 %492 }
  0xbe   : > { %v506_v50 = vpop.permute.xlu1 %505  ;;  %v573_v57 = vsel %vm569_vm12, %v564_v2, %v493_v49 }
  0xbf   : > { %v584_v1 = vsel %vm578_vm13, %v575_v54, %v506_v50 }
  0xc1   : > { %v502_v30 = vpop.permute.xlu0 %501 }
  0xc2   : > { %v508_v36 = vpop.permute.xlu1 %507  ;;  %v580_v61 = vsel %vm578_vm13, %v571_v8, %v502_v30 }
  0xc3   : > { %v586_v63 = vsel %vm578_vm13, %v577_v26, %v508_v36 }
  0xc5   : > { %v504_v55 = vpop.permute.xlu0 %503 }
  0xc6   : > { %v517_v3 = vpop.permute.xlu1 %516  ;;  %v582_v11 = vsel %vm578_vm13, %v573_v57, %v504_v55 }
  0xc7   : > { %v593_v59 = vsel %vm587_vm14, %v584_v1, %v517_v3 }
  0xc8   : > { %858 = vmatprep.mubr.msk.bf16.mxu1 %vm616_vm15, %v593_v59 }
  0xc9   : > { %v513_v21 = vpop.permute.xlu0 %512 }
  0xca   : > { %v589_v24 = vsel %vm587_vm14, %v580_v61, %v513_v21  ;;  %v519_v29 = vpop.permute.xlu1 %518 }
  0xcb   : > { %854 = vmatprep.mubr.msk.bf16.mxu0 %vm616_vm15, %v589_v24  ;;  %v595_v7 = vsel %vm587_vm14, %v586_v63, %v519_v29 }
  0xcc   : > { %859 = vmatmul.mubr.msk.bf16.vlgmr.msra.gmra.mxu1 %vm616_vm15, %v595_v7 }
  0xcd   : > { %v515_v13 = vpop.permute.xlu0 %514 }
  0xce   : > { %v591_v17 = vsel %vm587_vm14, %v582_v11, %v515_v13 }
  0xcf   : > { %855 = vmatmul.mubr.msk.bf16.vlgmr.msra.gmra.mxu0 %vm616_vm15, %v591_v17 }
 0x18c   : > { %v860_v19 = vpop.f32.mrf.mxu1 }
 0x18d   : > { %700 = vst [vmem:[%s167_s22 + $0x30] sm:$0xff] %v860_v19 }
 0x18e   : > { %v679_v15 = vpop.f32.mrf.mxu1 }
 0x18f   : > { %v856_v23 = vpop.f32.mrf.mxu0  ;;  %698 = vst [vmem:[%s167_s22 + $0x20] sm:$0xff] %v679_v15 }
 0x190   : > { %696 = vst [vmem:[%s167_s22 + $0x10] sm:$0xff] %v856_v23  ;;  %v861_v28 = vpop.f32.mrf.mxu1 }
 0x191   : > { %v663_v32 = vpop.f32.mrf.mxu0  ;;  %701 = vst [vmem:[%s167_s22 + $0x38] sm:$0xff] %v861_v28 }
 0x192   : > { %694 = vst [vmem:[%s167_s22] sm:$0xff] %v663_v32  ;;  %v682_v16 = vpop.f32.mrf.mxu1 }
 0x193   : > { %v857_v34 = vpop.f32.mrf.mxu0  ;;  %699 = vst [vmem:[%s167_s22 + $0x28] sm:$0xff] %v682_v16 }
 0x194   : > { %697 = vst [vmem:[%s167_s22 + $0x18] sm:$0xff] %v857_v34 }
 0x195   : > { %v666_v37 = vpop.f32.mrf.mxu0 }
 0x196   : > { %695 = vst [vmem:[%s167_s22 + $0x8] sm:$0xff] %v666_v37 }
 0x197 PF: > { %s12_s13 = sadd.s32 1, %s966_s13   ;;  %s1323_s9 = smov %s958_s11 }
 0x198   : > { %p9_p7 = scmp.ge.s32.totalorder %s12_s13, 10   ;;  %s1324_s10 = smov %s962_s12 }
 0x199   : > { %s1325_s11 = smov %s1328_s14  ;;  %s1326_s12 = smov %s1332_s15 }
 0x19a   :  { %11 = sbr.rel (!%p9_p7) target bundleno = 3 (0x3), region = 59 }

</bundles_post_ra>
